<compile_context>
chip_gen: v7x
topology: tpu7x:2x2x1
jax: 0.10.0
libtpu: 0.0.40
codegen_flags: <defaults>
</compile_context>

<pallas_src>
import functools
import numpy as np

import jax
import jax.numpy as jnp
from jax.experimental import pallas as pl
from jax.experimental.pallas import tpu as pltpu


def _resnet_block_kernel(mask_ref, x_ref, w1_ref, b1_ref, w2_ref, b2_ref,
                         o_ref, *, K, W, HW, B, pad, eps):
    # mask_ref: (K*K*C, B*HW)  0/1 tap-validity mask, row = tap*C + ci
    # x_ref   : (C, B*HW)      B images side by side on the lane axis
    # wK_ref  : (C, K*K*C)     column index = (kh*K + kw)*C + ci
    # bK_ref  : (C, 1)
    # o_ref   : (C, B*HW)
    x = x_ref[...]                       # (C, B*HW) f32
    mask = mask_ref[...]                 # (K*K*C, B*HW)
    BHW = B * HW

    # Static circular lane shift per conv tap over the flattened B*H*W axis.
    # result[p] = x[p + dh*W + dw]; out-of-image positions (including lanes that
    # wrapped into a neighboring image) are zeroed by the mask.
    shifts = [(-((kh - pad) * W + (kw - pad))) % BHW
              for kh in range(K) for kw in range(K)]

    def conv(a, w_ref, b_ref):
        # im2col: K*K rolled copies of `a` stacked on sublanes, ONE dense mask
        # multiply, then a single (C, K*K*C) x (K*K*C, B*HW) MXU push.
        rows = [a if s == 0 else pltpu.roll(a, shift=s, axis=1) for s in shifts]
        patches = jnp.concatenate(rows, axis=0) * mask        # (K*K*C, B*HW)
        return jnp.dot(w_ref[...], patches,
                       preferred_element_type=jnp.float32) + b_ref[...]

    inv_hw = 1.0 / HW

    def inorm(a):
        # InstanceNorm2d (biased variance), per image, per channel.
        # One-pass fused stats: sum + sum-of-squares, var = E[x^2] - m^2.
        parts = []
        for i in range(B):                       # static 128-aligned lane slices
            ai = a[:, i * HW:(i + 1) * HW]       # (C, HW)
            s1 = jnp.sum(ai, axis=1, keepdims=True)
            s2 = jnp.sum(ai * ai, axis=1, keepdims=True)
            m = s1 * inv_hw
            v = jnp.maximum(s2 * inv_hw - m * m, 0.0)
            parts.append((ai - m) * jax.lax.rsqrt(v + eps))
        return parts[0] if B == 1 else jnp.concatenate(parts, axis=1)

    y = jnp.maximum(inorm(conv(x, w1_ref, b1_ref)), 0.0)      # conv1 + IN + ReLU
    y2 = inorm(conv(y, w2_ref, b2_ref))                       # conv2 + IN
    o_ref[...] = (x + y2).astype(o_ref.dtype)                 # residual add


def resnet_block_forward(x_nchw, w1, b1, w2, b2, *, kernel, stride, padding,
                         eps=1e-5, block_batch=None):
    """x: (N,C,H,W); w: (C_out,C_in,K,K) (PyTorch layout); b: (C,). Returns NCHW."""
    N, C, H, W = x_nchw.shape
    Ho = (H + 2 * padding - kernel) // stride + 1
    Wo = (W + 2 * padding - kernel) // stride + 1
    assert stride == 1 and Ho == H and Wo == W, \
        "residual add requires a shape-preserving (stride-1) conv"
    HW = H * W
    KKC = kernel * kernel * C

    # Images per grid block: fill at least 8 sublanes worth of work per step
    # (and must divide N).  On v7x with larger N, pick block_batch = N // (2k)
    # so the parallel grid keeps both TensorCores busy.
    if block_batch is None:
        block_batch = max(1, 8 // C)
    B = max(1, min(block_batch, N))
    while N % B:
        B -= 1
    BHW = B * HW

    # Lane-batched layout: channels -> sublanes, (image, spatial) -> lanes.
    # One tiny XLA transpose in the wrapper; each grid block is then a plain
    # aligned lane window of B images.
    x2d = jnp.transpose(x_nchw, (1, 0, 2, 3)).reshape(C, N * HW).astype(jnp.float32)

    # (C_out, C_in, K, K) -> (C_out, K*K*C_in), column order = tap*C + ci.
    def to_mat(w):
        return jnp.transpose(w, (0, 2, 3, 1)).reshape(C, KKC).astype(jnp.float32)

    w1m, w2m = to_mat(w1), to_mat(w2)
    b1c = b1.reshape(C, 1).astype(jnp.float32)
    b2c = b2.reshape(C, 1).astype(jnp.float32)

    # Full (K*K*C, B*HW) 0/1 padding mask (compile-time constant): row tap*C+ci
    # is the validity of tap `tap` at each spatial position, tiled over the B
    # images in a block.  Applied once per conv to the whole im2col slab.
    hh, ww = np.meshgrid(np.arange(H), np.arange(W), indexing="ij")
    hh, ww = hh.reshape(-1), ww.reshape(-1)
    tap_rows = []
    for kh in range(kernel):
        for kw in range(kernel):
            dh, dw = kh - padding, kw - padding
            valid = ((hh + dh >= 0) & (hh + dh < H) &
                     (ww + dw >= 0) & (ww + dw < W))
            tap_rows.append(valid.astype(np.float32))
    valid_taps = np.stack(tap_rows, axis=0)                   # (K*K, HW)
    mask_full = np.repeat(np.tile(valid_taps, (1, B)), C, axis=0)  # (K*K*C, B*HW)
    mask_full = jnp.asarray(mask_full)

    kern = functools.partial(_resnet_block_kernel, K=kernel, W=W, HW=HW, B=B,
                             pad=padding, eps=eps)

    out = pl.pallas_call(
        kern,
        out_shape=jax.ShapeDtypeStruct((C, N * HW), jnp.float32),
        grid_spec=pltpu.PrefetchScalarGridSpec(
            num_scalar_prefetch=0,
            grid=(N // B,),
            in_specs=[
                pl.BlockSpec((KKC, BHW), lambda n: (0, 0)),   # padding mask
                pl.BlockSpec((C, BHW), lambda n: (0, n)),     # B images / block
                pl.BlockSpec((C, KKC), lambda n: (0, 0)),
                pl.BlockSpec((C, 1), lambda n: (0, 0)),
                pl.BlockSpec((C, KKC), lambda n: (0, 0)),
                pl.BlockSpec((C, 1), lambda n: (0, 0)),
            ],
            out_specs=pl.BlockSpec((C, BHW), lambda n: (0, n)),
        ),
        compiler_params=pltpu.CompilerParams(
            dimension_semantics=("parallel",)),   # independent image groups
    )(mask_full, x2d, w1m, b1c, w2m, b2c)

    # Back to NCHW (lane order within a block is image-major, so this is exact).
    return jnp.transpose(out.reshape(C, N, H, W), (1, 0, 2, 3))


def _ref_forward(x_nchw, w1, b1, w2, b2, *, stride, padding, eps=1e-5):
    """Pure-JAX reference (mirrors the PyTorch forward) for validation."""
    def conv(x, w, b):
        y = jax.lax.conv_general_dilated(
            x, w, (stride, stride), [(padding, padding), (padding, padding)],
            dimension_numbers=("NCHW", "OIHW", "NCHW"))
        return y + b[None, :, None, None]

    def inorm(x):
        m = x.mean(axis=(2, 3), keepdims=True)
        v = ((x - m) ** 2).mean(axis=(2, 3), keepdims=True)
        return (x - m) * jax.lax.rsqrt(v + eps)

    h = jax.nn.relu(inorm(conv(x_nchw, w1, b1)))
    h = inorm(conv(h, w2, b2))
    return x_nchw + h


if __name__ == "__main__":
    # Module config (shape-preserving, as used in a resnet block)
    channel, kernel, stride, padding = 4, 3, 1, 1
    batch, H, W = 2, 16, 16

    key = jax.random.PRNGKey(0)
    kx, kw1, kw2 = jax.random.split(key, 3)

    x = jax.random.normal(kx, (batch, channel, H, W), dtype=jnp.float32)
    # utils.initialize_weights: conv weights ~ N(0, 0.02), biases zero.
    # PyTorch Conv2d weight layout: (C_out, C_in, K, K).
    w1 = 0.02 * jax.random.normal(kw1, (channel, channel, kernel, kernel),
                                  dtype=jnp.float32)
    w2 = 0.02 * jax.random.normal(kw2, (channel, channel, kernel, kernel),
                                  dtype=jnp.float32)
    b1 = jnp.zeros((channel,), jnp.float32)
    b2 = jnp.zeros((channel,), jnp.float32)

    out = resnet_block_forward(x, w1, b1, w2, b2,
                               kernel=kernel, stride=stride, padding=padding)
    out = jax.block_until_ready(out)

    ref = _ref_forward(x, w1, b1, w2, b2, stride=stride, padding=padding)
    assert out.shape == (batch, channel, H, W)
    assert jnp.allclose(out, ref, atol=1e-4, rtol=1e-4), "mismatch vs reference"

    print("KERNEL_OK")
</pallas_src>

<mosaic_0001>
module attributes {stable_mosaic.version = 11 : i64} {
  func.func @_resnet_block_kernel(%arg0: i32, %arg1: memref<36x512xf32, #tpu.memory_space<vmem>>, %arg2: memref<4x512xf32, #tpu.memory_space<vmem>>, %arg3: memref<4x36xf32, #tpu.memory_space<vmem>>, %arg4: memref<4x1xf32, #tpu.memory_space<vmem>>, %arg5: memref<4x36xf32, #tpu.memory_space<vmem>>, %arg6: memref<4x1xf32, #tpu.memory_space<vmem>>, %arg7: memref<4x512xf32, #tpu.memory_space<vmem>>) attributes {dimension_semantics = [#tpu.dimension_semantics<parallel>], iteration_bounds = array<i64: 1>, scalar_prefetch = 0 : i64, scratch_operands = 0 : i64, tpu.core_type = #tpu.core_type<tc>, window_params = [{pipeline_mode = #tpu.pipeline_mode<synchronous>, transform_indices = @transform_0, window_bounds = array<i64: 36, 512>}, {transform_indices = @transform_1, window_bounds = array<i64: 4, 512>}, {pipeline_mode = #tpu.pipeline_mode<synchronous>, transform_indices = @transform_2, window_bounds = array<i64: 4, 36>}, {pipeline_mode = #tpu.pipeline_mode<synchronous>, transform_indices = @transform_3, window_bounds = array<i64: 4, 1>}, {pipeline_mode = #tpu.pipeline_mode<synchronous>, transform_indices = @transform_4, window_bounds = array<i64: 4, 36>}, {pipeline_mode = #tpu.pipeline_mode<synchronous>, transform_indices = @transform_5, window_bounds = array<i64: 4, 1>}, {transform_indices = @transform_6, window_bounds = array<i64: 4, 512>}]} {
    %c0 = arith.constant 0 : index
    %c0_0 = arith.constant 0 : index
    %0 = vector.load %arg2[%c0, %c0_0] : memref<4x512xf32, #tpu.memory_space<vmem>>, vector<4x512xf32>
    %c0_1 = arith.constant 0 : index
    %c0_2 = arith.constant 0 : index
    %1 = vector.load %arg1[%c0_1, %c0_2] : memref<36x512xf32, #tpu.memory_space<vmem>>, vector<36x512xf32>
    %c17_i32 = arith.constant 17 : i32
    %2 = tpu.dynamic_rotate %0 by %c17_i32 dim 1 : vector<4x512xf32>, i32 -> vector<4x512xf32>
    %c16_i32 = arith.constant 16 : i32
    %3 = tpu.dynamic_rotate %0 by %c16_i32 dim 1 : vector<4x512xf32>, i32 -> vector<4x512xf32>
    %c15_i32 = arith.constant 15 : i32
    %4 = tpu.dynamic_rotate %0 by %c15_i32 dim 1 : vector<4x512xf32>, i32 -> vector<4x512xf32>
    %c1_i32 = arith.constant 1 : i32
    %5 = tpu.dynamic_rotate %0 by %c1_i32 dim 1 : vector<4x512xf32>, i32 -> vector<4x512xf32>
    %c511_i32 = arith.constant 511 : i32
    %6 = tpu.dynamic_rotate %0 by %c511_i32 dim 1 : vector<4x512xf32>, i32 -> vector<4x512xf32>
    %c497_i32 = arith.constant 497 : i32
    %7 = tpu.dynamic_rotate %0 by %c497_i32 dim 1 : vector<4x512xf32>, i32 -> vector<4x512xf32>
    %c496_i32 = arith.constant 496 : i32
    %8 = tpu.dynamic_rotate %0 by %c496_i32 dim 1 : vector<4x512xf32>, i32 -> vector<4x512xf32>
    %c495_i32 = arith.constant 495 : i32
    %9 = tpu.dynamic_rotate %0 by %c495_i32 dim 1 : vector<4x512xf32>, i32 -> vector<4x512xf32>
    %10 = tpu.concatenate %2, %3, %4, %5, %0, %6, %7, %8, %9 in 0 : vector<4x512xf32>, vector<4x512xf32>, vector<4x512xf32>, vector<4x512xf32>, vector<4x512xf32>, vector<4x512xf32>, vector<4x512xf32>, vector<4x512xf32>, vector<4x512xf32> -> vector<36x512xf32>
    %11 = arith.mulf %10, %1 : vector<36x512xf32>
    %c0_3 = arith.constant 0 : index
    %c0_4 = arith.constant 0 : index
    %12 = vector.load %arg3[%c0_3, %c0_4] : memref<4x36xf32, #tpu.memory_space<vmem>>, vector<4x36xf32>
    %cst = arith.constant dense<0.000000e+00> : vector<4x512xf32>
    %13 = tpu.matmul %12, %11, %cst {dimension_numbers = #tpu.dot_dimension_numbers<[1], [0], [0], [1], [0, 0, 1, 1], [], []>} : vector<4x36xf32>, vector<36x512xf32>, vector<4x512xf32> -> vector<4x512xf32>
    %c0_5 = arith.constant 0 : index
    %c0_6 = arith.constant 0 : index
    %14 = vector.load %arg4[%c0_5, %c0_6] : memref<4x1xf32, #tpu.memory_space<vmem>>, vector<4x1xf32>
    %15 = vector.broadcast %14 : vector<4x1xf32> to vector<4x512xf32>
    %16 = arith.addf %13, %15 : vector<4x512xf32>
    %17 = vector.extract_strided_slice %16 {offsets = [0, 0], sizes = [4, 256], strides = [1, 1]} : vector<4x512xf32> to vector<4x256xf32>
    %cst_7 = arith.constant dense<0.000000e+00> : vector<4xf32>
    %18 = vector.multi_reduction <add>, %17, %cst_7 [1] : vector<4x256xf32> to vector<4xf32>
    %19 = vector.shape_cast %18 : vector<4xf32> to vector<4x1xf32>
    %20 = arith.mulf %17, %17 : vector<4x256xf32>
    %cst_8 = arith.constant dense<0.000000e+00> : vector<4xf32>
    %21 = vector.multi_reduction <add>, %20, %cst_8 [1] : vector<4x256xf32> to vector<4xf32>
    %22 = vector.shape_cast %21 : vector<4xf32> to vector<4x1xf32>
    %cst_9 = arith.constant 3.906250e-03 : f32
    %23 = vector.broadcast %cst_9 : f32 to vector<4x1xf32>
    %24 = arith.mulf %19, %23 : vector<4x1xf32>
    %cst_10 = arith.constant 3.906250e-03 : f32
    %25 = vector.broadcast %cst_10 : f32 to vector<4x1xf32>
    %26 = arith.mulf %22, %25 : vector<4x1xf32>
    %27 = arith.mulf %24, %24 : vector<4x1xf32>
    %28 = arith.subf %26, %27 : vector<4x1xf32>
    %cst_11 = arith.constant 0.000000e+00 : f32
    %29 = vector.broadcast %cst_11 : f32 to vector<4x1xf32>
    %30 = arith.maximumf %28, %29 : vector<4x1xf32>
    %31 = vector.broadcast %24 : vector<4x1xf32> to vector<4x256xf32>
    %32 = arith.subf %17, %31 : vector<4x256xf32>
    %cst_12 = arith.constant 9.99999974E-6 : f32
    %33 = vector.broadcast %cst_12 : f32 to vector<4x1xf32>
    %34 = arith.addf %30, %33 : vector<4x1xf32>
    %35 = math.rsqrt %34 : vector<4x1xf32>
    %36 = vector.broadcast %35 : vector<4x1xf32> to vector<4x256xf32>
    %37 = arith.mulf %32, %36 : vector<4x256xf32>
    %38 = vector.extract_strided_slice %16 {offsets = [0, 256], sizes = [4, 256], strides = [1, 1]} : vector<4x512xf32> to vector<4x256xf32>
    %cst_13 = arith.constant dense<0.000000e+00> : vector<4xf32>
    %39 = vector.multi_reduction <add>, %38, %cst_13 [1] : vector<4x256xf32> to vector<4xf32>
    %40 = vector.shape_cast %39 : vector<4xf32> to vector<4x1xf32>
    %41 = arith.mulf %38, %38 : vector<4x256xf32>
    %cst_14 = arith.constant dense<0.000000e+00> : vector<4xf32>
    %42 = vector.multi_reduction <add>, %41, %cst_14 [1] : vector<4x256xf32> to vector<4xf32>
    %43 = vector.shape_cast %42 : vector<4xf32> to vector<4x1xf32>
    %cst_15 = arith.constant 3.906250e-03 : f32
    %44 = vector.broadcast %cst_15 : f32 to vector<4x1xf32>
    %45 = arith.mulf %40, %44 : vector<4x1xf32>
    %cst_16 = arith.constant 3.906250e-03 : f32
    %46 = vector.broadcast %cst_16 : f32 to vector<4x1xf32>
    %47 = arith.mulf %43, %46 : vector<4x1xf32>
    %48 = arith.mulf %45, %45 : vector<4x1xf32>
    %49 = arith.subf %47, %48 : vector<4x1xf32>
    %cst_17 = arith.constant 0.000000e+00 : f32
    %50 = vector.broadcast %cst_17 : f32 to vector<4x1xf32>
    %51 = arith.maximumf %49, %50 : vector<4x1xf32>
    %52 = vector.broadcast %45 : vector<4x1xf32> to vector<4x256xf32>
    %53 = arith.subf %38, %52 : vector<4x256xf32>
    %cst_18 = arith.constant 9.99999974E-6 : f32
    %54 = vector.broadcast %cst_18 : f32 to vector<4x1xf32>
    %55 = arith.addf %51, %54 : vector<4x1xf32>
    %56 = math.rsqrt %55 : vector<4x1xf32>
    %57 = vector.broadcast %56 : vector<4x1xf32> to vector<4x256xf32>
    %58 = arith.mulf %53, %57 : vector<4x256xf32>
    %59 = tpu.concatenate %37, %58 in 1 : vector<4x256xf32>, vector<4x256xf32> -> vector<4x512xf32>
    %cst_19 = arith.constant 0.000000e+00 : f32
    %60 = vector.broadcast %cst_19 : f32 to vector<4x512xf32>
    %61 = arith.maximumf %59, %60 : vector<4x512xf32>
    %c17_i32_20 = arith.constant 17 : i32
    %62 = tpu.dynamic_rotate %61 by %c17_i32_20 dim 1 : vector<4x512xf32>, i32 -> vector<4x512xf32>
    %c16_i32_21 = arith.constant 16 : i32
    %63 = tpu.dynamic_rotate %61 by %c16_i32_21 dim 1 : vector<4x512xf32>, i32 -> vector<4x512xf32>
    %c15_i32_22 = arith.constant 15 : i32
    %64 = tpu.dynamic_rotate %61 by %c15_i32_22 dim 1 : vector<4x512xf32>, i32 -> vector<4x512xf32>
    %c1_i32_23 = arith.constant 1 : i32
    %65 = tpu.dynamic_rotate %61 by %c1_i32_23 dim 1 : vector<4x512xf32>, i32 -> vector<4x512xf32>
    %c511_i32_24 = arith.constant 511 : i32
    %66 = tpu.dynamic_rotate %61 by %c511_i32_24 dim 1 : vector<4x512xf32>, i32 -> vector<4x512xf32>
    %c497_i32_25 = arith.constant 497 : i32
    %67 = tpu.dynamic_rotate %61 by %c497_i32_25 dim 1 : vector<4x512xf32>, i32 -> vector<4x512xf32>
    %c496_i32_26 = arith.constant 496 : i32
    %68 = tpu.dynamic_rotate %61 by %c496_i32_26 dim 1 : vector<4x512xf32>, i32 -> vector<4x512xf32>
    %c495_i32_27 = arith.constant 495 : i32
    %69 = tpu.dynamic_rotate %61 by %c495_i32_27 dim 1 : vector<4x512xf32>, i32 -> vector<4x512xf32>
    %70 = tpu.concatenate %62, %63, %64, %65, %61, %66, %67, %68, %69 in 0 : vector<4x512xf32>, vector<4x512xf32>, vector<4x512xf32>, vector<4x512xf32>, vector<4x512xf32>, vector<4x512xf32>, vector<4x512xf32>, vector<4x512xf32>, vector<4x512xf32> -> vector<36x512xf32>
    %71 = arith.mulf %70, %1 : vector<36x512xf32>
    %c0_28 = arith.constant 0 : index
    %c0_29 = arith.constant 0 : index
    %72 = vector.load %arg5[%c0_28, %c0_29] : memref<4x36xf32, #tpu.memory_space<vmem>>, vector<4x36xf32>
    %cst_30 = arith.constant dense<0.000000e+00> : vector<4x512xf32>
    %73 = tpu.matmul %72, %71, %cst_30 {dimension_numbers = #tpu.dot_dimension_numbers<[1], [0], [0], [1], [0, 0, 1, 1], [], []>} : vector<4x36xf32>, vector<36x512xf32>, vector<4x512xf32> -> vector<4x512xf32>
    %c0_31 = arith.constant 0 : index
    %c0_32 = arith.constant 0 : index
    %74 = vector.load %arg6[%c0_31, %c0_32] : memref<4x1xf32, #tpu.memory_space<vmem>>, vector<4x1xf32>
    %75 = vector.broadcast %74 : vector<4x1xf32> to vector<4x512xf32>
    %76 = arith.addf %73, %75 : vector<4x512xf32>
    %77 = vector.extract_strided_slice %76 {offsets = [0, 0], sizes = [4, 256], strides = [1, 1]} : vector<4x512xf32> to vector<4x256xf32>
    %cst_33 = arith.constant dense<0.000000e+00> : vector<4xf32>
    %78 = vector.multi_reduction <add>, %77, %cst_33 [1] : vector<4x256xf32> to vector<4xf32>
    %79 = vector.shape_cast %78 : vector<4xf32> to vector<4x1xf32>
    %80 = arith.mulf %77, %77 : vector<4x256xf32>
    %cst_34 = arith.constant dense<0.000000e+00> : vector<4xf32>
    %81 = vector.multi_reduction <add>, %80, %cst_34 [1] : vector<4x256xf32> to vector<4xf32>
    %82 = vector.shape_cast %81 : vector<4xf32> to vector<4x1xf32>
    %cst_35 = arith.constant 3.906250e-03 : f32
    %83 = vector.broadcast %cst_35 : f32 to vector<4x1xf32>
    %84 = arith.mulf %79, %83 : vector<4x1xf32>
    %cst_36 = arith.constant 3.906250e-03 : f32
    %85 = vector.broadcast %cst_36 : f32 to vector<4x1xf32>
    %86 = arith.mulf %82, %85 : vector<4x1xf32>
    %87 = arith.mulf %84, %84 : vector<4x1xf32>
    %88 = arith.subf %86, %87 : vector<4x1xf32>
    %cst_37 = arith.constant 0.000000e+00 : f32
    %89 = vector.broadcast %cst_37 : f32 to vector<4x1xf32>
    %90 = arith.maximumf %88, %89 : vector<4x1xf32>
    %91 = vector.broadcast %84 : vector<4x1xf32> to vector<4x256xf32>
    %92 = arith.subf %77, %91 : vector<4x256xf32>
    %cst_38 = arith.constant 9.99999974E-6 : f32
    %93 = vector.broadcast %cst_38 : f32 to vector<4x1xf32>
    %94 = arith.addf %90, %93 : vector<4x1xf32>
    %95 = math.rsqrt %94 : vector<4x1xf32>
    %96 = vector.broadcast %95 : vector<4x1xf32> to vector<4x256xf32>
    %97 = arith.mulf %92, %96 : vector<4x256xf32>
    %98 = vector.extract_strided_slice %76 {offsets = [0, 256], sizes = [4, 256], strides = [1, 1]} : vector<4x512xf32> to vector<4x256xf32>
    %cst_39 = arith.constant dense<0.000000e+00> : vector<4xf32>
    %99 = vector.multi_reduction <add>, %98, %cst_39 [1] : vector<4x256xf32> to vector<4xf32>
    %100 = vector.shape_cast %99 : vector<4xf32> to vector<4x1xf32>
    %101 = arith.mulf %98, %98 : vector<4x256xf32>
    %cst_40 = arith.constant dense<0.000000e+00> : vector<4xf32>
    %102 = vector.multi_reduction <add>, %101, %cst_40 [1] : vector<4x256xf32> to vector<4xf32>
    %103 = vector.shape_cast %102 : vector<4xf32> to vector<4x1xf32>
    %cst_41 = arith.constant 3.906250e-03 : f32
    %104 = vector.broadcast %cst_41 : f32 to vector<4x1xf32>
    %105 = arith.mulf %100, %104 : vector<4x1xf32>
    %cst_42 = arith.constant 3.906250e-03 : f32
    %106 = vector.broadcast %cst_42 : f32 to vector<4x1xf32>
    %107 = arith.mulf %103, %106 : vector<4x1xf32>
    %108 = arith.mulf %105, %105 : vector<4x1xf32>
    %109 = arith.subf %107, %108 : vector<4x1xf32>
    %cst_43 = arith.constant 0.000000e+00 : f32
    %110 = vector.broadcast %cst_43 : f32 to vector<4x1xf32>
    %111 = arith.maximumf %109, %110 : vector<4x1xf32>
    %112 = vector.broadcast %105 : vector<4x1xf32> to vector<4x256xf32>
    %113 = arith.subf %98, %112 : vector<4x256xf32>
    %cst_44 = arith.constant 9.99999974E-6 : f32
    %114 = vector.broadcast %cst_44 : f32 to vector<4x1xf32>
    %115 = arith.addf %111, %114 : vector<4x1xf32>
    %116 = math.rsqrt %115 : vector<4x1xf32>
    %117 = vector.broadcast %116 : vector<4x1xf32> to vector<4x256xf32>
    %118 = arith.mulf %113, %117 : vector<4x256xf32>
    %119 = tpu.concatenate %97, %118 in 1 : vector<4x256xf32>, vector<4x256xf32> -> vector<4x512xf32>
    %120 = arith.addf %0, %119 : vector<4x512xf32>
    %c0_45 = arith.constant 0 : index
    %c0_46 = arith.constant 0 : index
    %121 = vector.load %arg7[%c0_45, %c0_46] : memref<4x512xf32, #tpu.memory_space<vmem>>, vector<4x512xf32>
    tpu.vector_store %arg7[%c0_45, %c0_46], %120 {strides = array<i32>} : memref<4x512xf32, #tpu.memory_space<vmem>>, vector<4x512xf32>,
    return
  }
  func.func @transform_0(%arg0: i32) -> (i32, i32) {
    %c0_i32 = arith.constant 0 : i32
    %c0_i32_0 = arith.constant 0 : i32
    %c0_i32_1 = arith.constant 0 : i32
    return %c0_i32, %c0_i32_0 : i32, i32
  }
  func.func @transform_1(%arg0: i32) -> (i32, i32) {
    %c0_i32 = arith.constant 0 : i32
    %c0_i32_0 = arith.constant 0 : i32
    return %c0_i32, %arg0 : i32, i32
  }
  func.func @transform_2(%arg0: i32) -> (i32, i32) {
    %c0_i32 = arith.constant 0 : i32
    %c0_i32_0 = arith.constant 0 : i32
    %c0_i32_1 = arith.constant 0 : i32
    return %c0_i32, %c0_i32_0 : i32, i32
  }
  func.func @transform_3(%arg0: i32) -> (i32, i32) {
    %c0_i32 = arith.constant 0 : i32
    %c0_i32_0 = arith.constant 0 : i32
    %c0_i32_1 = arith.constant 0 : i32
    return %c0_i32, %c0_i32_0 : i32, i32
  }
  func.func @transform_4(%arg0: i32) -> (i32, i32) {
    %c0_i32 = arith.constant 0 : i32
    %c0_i32_0 = arith.constant 0 : i32
    %c0_i32_1 = arith.constant 0 : i32
    return %c0_i32, %c0_i32_0 : i32, i32
  }
  func.func @transform_5(%arg0: i32) -> (i32, i32) {
    %c0_i32 = arith.constant 0 : i32
    %c0_i32_0 = arith.constant 0 : i32
    %c0_i32_1 = arith.constant 0 : i32
    return %c0_i32, %c0_i32_0 : i32, i32
  }
  func.func @transform_6(%arg0: i32) -> (i32, i32) {
    %c0_i32 = arith.constant 0 : i32
    %c0_i32_0 = arith.constant 0 : i32
    return %c0_i32, %arg0 : i32, i32
  }
}

</mosaic_0001>

<bundles_post_ra>
// kernel: tpu_custom_call.1
= control target key start
LH: loop header
LB: loop body
LE: loop exit
PB: predicated region body
PF: predicated region fallthrough
CT: control target
= control target key end

     0   :  { %11 = vsyncpa [#allocation3], 0  ;;  %s1582_s0 = inlined_call_operand.hbm [shape: f32[36,512], index: 0, kind: input, shape index: {}]   ;;  %s1583_s1 = inlined_call_operand.hbm [shape: f32[4,512], index: 1, kind: input, shape index: {}]   ;;  %s1584_s2 = inlined_call_operand.vmem [shape: f32[4,36], index: 2, kind: input, shape index: {}]   ;;  %s1585_s3 = inlined_call_operand.vmem [shape: f32[4,1], index: 3, kind: input, shape index: {}]   ;;  %s1586_s4 = inlined_call_operand.vmem [shape: f32[4,36], index: 4, kind: input, shape index: {}]   ;;  %s1587_s5 = inlined_call_operand.vmem [shape: f32[4,1], index: 5, kind: input, shape index: {}]   ;;  %s1588_s6 = inlined_call_operand.hbm [shape: f32[4,512], index: 6, kind: output, shape index: {}]  }
   0x1   :  { %12 = vsyncpa [#allocation6], 0 }
   0x2   :  { %13 = vsyncpa [#allocation4], 0  ;;  %s1046_s21 = smov [#allocation2]   ;;  %s974_s25 = scalar_lea.hbm %s1582_s0, 2560 }
   0x3   :  { %s19_s22 = sshll.u32 %s1046_s21, 4  ;;  %p975_p0 = scmp.ne.s32.totalorder %s1582_s0, %s974_s25  ;;  %s20_s22 = int_to_ptr.vmem [resolvable:$true] %s19_s22 }
   0x4   :  { %p978_p1 = scmp.lt.u32.totalorder %s974_s25, %s1582_s0 }
   0x6   :  { %p980_p2 = pnand %p978_p1, %p975_p0 }
   0x8   :  { %983 = shalt.err (!%p980_p2)
}
   0x9   :  { %s984_s30 = scalar_lea.vmem %s20_s22, 2560  ;;  %p989_p4 = scmp.lt.s32.totalorder %s20_s22, %s20_s22 }
   0xa   :  { %p985_p3 = scmp.ne.s32.totalorder %s20_s22, %s984_s30  ;;  %p990_p5 = scmp.lt.s32.totalorder %s984_s30, %s984_s30 }
   0xc   :  { %p991_p6 = por %p990_p5, %p989_p4 }
   0xe   :  { %p992_p7 = pnand %p991_p6, %p985_p3 }
  0x10   :  { %995 = shalt.err (!%p992_p7)
}
  0x11   :  { %s1047_s7 = smov 512   ;;  %s1048_s8 = smov 32  }
  0x12   :  { %25 = dma.hbm_to_vmem [thread:$0]  %s1582_s0, 2560, %s20_s22, [#allocation3], %s1047_s7, %s1047_s7, %s1048_s8  }
  0x13   :  { %s1049_s11 = smov [#allocation5]   ;;  %s996_s15 = scalar_lea.hbm %s1583_s1, 256 }
  0x14   :  { %s32_s12 = sshll.u32 %s1049_s11, 4  ;;  %p997_p8 = scmp.ne.s32.totalorder %s1583_s1, %s996_s15  ;;  %s33_s12 = int_to_ptr.vmem [resolvable:$true] %s32_s12 }
  0x15   :  { %p1000_p9 = scmp.lt.u32.totalorder %s996_s15, %s1583_s1 }
  0x17   :  { %p1002_p10 = pnand %p1000_p9, %p997_p8 }
  0x19   :  { %1005 = shalt.err (!%p1002_p10)
}
  0x1a   :  { %s1006_s20 = scalar_lea.vmem %s33_s12, 256  ;;  %p1011_p12 = scmp.lt.s32.totalorder %s33_s12, %s33_s12 }
  0x1b   :  { %p1007_p11 = scmp.ne.s32.totalorder %s33_s12, %s1006_s20  ;;  %p1012_p13 = scmp.lt.s32.totalorder %s1006_s20, %s1006_s20 }
  0x1d   :  { %p1013_p0 = por %p1012_p13, %p1011_p12 }
  0x1f   :  { %p1014_p1 = pnand %p1013_p0, %p1007_p11 }
  0x21   :  { %1017 = shalt.err (!%p1014_p1)
}
  0x22   :  { %35 = dma.hbm_to_vmem [thread:$0]  %s1583_s1, 256, %s33_s12, [#allocation6]  }
  0x23   :  { %1040 = dma.done.wait [#allocation3], 2560  }
  0x24   :  { %1041 = vsyncadd [#allocation3], 4294964736 }
  0x25   :  { %1042 = dma.done.wait [#allocation6], 256  }
  0x26   :  { %1043 = vsyncadd [#allocation6], 4294967040  ;;  %v1120_v0 = vld [vmem:[#allocation5 + $0x8] sm:$0xff]  ;;  %v1122_v1 = vld [vmem:[#allocation5] sm:$0xff]  ;;  %s1050_s22 = smov 16   ;;  %s1051_s1 = smov 1   ;;  %v86_v13 = vlaneseq }
  0x27   :  { %97 = vrot.lane.b32.xlu1 %v1120_v0, %s1050_s22  ;;  %93 = vrot.lane.b32.xlu0 %v1122_v1, %s1050_s22  ;;  %v1130_v2 = vcombine.high %v1120_v0, %v1120_v0  ;;  %v1138_v3 = vcombine.high %v1122_v1, %v1122_v1  ;;  %s1052_s23 = smov 17   ;;  %s1053_s24 = smov 15   ;;  %v1057_v4 = vmov 0.0   ;;  %v1058_v5 = vmov 0   ;;  %v270_v6 = vld [vmem:[%s1585_s3] sm:$0xf] }
  0x28   :  { %s1054_s25 = smov 127   ;;  %s1055_s26 = smov 112   ;;  %356 = vmatprep.mubr.f32.mxu0 %v1057_v4  ;;  %427 = vmatprep.mubr.f32.mxu1 %v1057_v4  ;;  %v1201_v16 = vand.u32 127, %v86_v13  ;;  %vm232_vm3 = vcmask 1043456   ;;  %v1227_v37 = vld [vmem:[#allocation2 + $0x8] sm:$0xff]  ;;  %v1239_v44 = vld [vmem:[#allocation2] sm:$0xff] }
  0x29   :  { %s1056_s27 = smov 113   ;;  %961 = vset.pattern.permute.xlu0 %v1058_v5  ;;  %s1059_s28 = smov 111   ;;  %v1229_v38 = vld [vmem:[#allocation2 + $0x28] sm:$0xff]  ;;  %v1244_v50 = vld [vmem:[#allocation2 + $0x18] sm:$0xff]  ;;  %v1247_v52 = vld [vmem:[#allocation2 + $0x10] sm:$0xff]  ;;  %vm276_vm9 = vcmask 293888  }
  0x2a   :  { %vm101_vm0 = vcmp.lt.s32.totalorder %v1201_v16, 16  ;;  %vm127_vm1 = vcmp.lt.s32.totalorder %v1201_v16, 1  ;;  %vm88_vm2 = vcmp.lt.s32.totalorder %v1201_v16, 17  ;;  %vm114_vm4 = vcmp.lt.s32.totalorder %v1201_v16, 15  ;;  %v1250_v58 = vld [vmem:[#allocation2 + $0x20] sm:$0xff]  ;;  %v1253_v60 = vld [vmem:[#allocation2 + $0x38] sm:$0xff] }
  0x2b   :  { %99 = vrot.lane.b32.xlu1 %v1130_v2, %s1050_s22  ;;  %119 = vrot.lane.b32.xlu0 %v1122_v1, %s1051_s1  ;;  %v1255_v61 = vld [vmem:[#allocation2 + $0x30] sm:$0xff]  ;;  %vm140_vm5 = vcmp.lt.s32.totalorder %v1201_v16, 127  ;;  %vm166_vm6 = vcmp.lt.s32.totalorder %v1201_v16, 112  ;;  %vm153_vm7 = vcmp.lt.s32.totalorder %v1201_v16, 113  ;;  %vm179_vm8 = vcmp.lt.s32.totalorder %v1201_v16, 111 }
  0x2f   :  { %121 = vrot.lane.b32.xlu1 %v1138_v3, %s1051_s1  ;;  %95 = vrot.lane.b32.xlu0 %v1138_v3, %s1050_s22 }
  0x33   :  { %125 = vrot.lane.b32.xlu1 %v1130_v2, %s1051_s1  ;;  %123 = vrot.lane.b32.xlu0 %v1120_v0, %s1051_s1 }
  0x37   :  { %80 = vrot.lane.b32.xlu1 %v1138_v3, %s1052_s23  ;;  %78 = vrot.lane.b32.xlu0 %v1122_v1, %s1052_s23 }
  0x3b   :  { %84 = vrot.lane.b32.xlu1 %v1130_v2, %s1052_s23  ;;  %82 = vrot.lane.b32.xlu0 %v1120_v0, %s1052_s23 }
  0x3f   :  { %108 = vrot.lane.b32.xlu1 %v1138_v3, %s1053_s24  ;;  %106 = vrot.lane.b32.xlu0 %v1122_v1, %s1053_s24 }
  0x43   :  { %112 = vrot.lane.b32.xlu1 %v1130_v2, %s1053_s24  ;;  %110 = vrot.lane.b32.xlu0 %v1120_v0, %s1053_s24 }
  0x47   :  { %134 = vrot.lane.b32.xlu1 %v1138_v3, %s1054_s25  ;;  %132 = vrot.lane.b32.xlu0 %v1122_v1, %s1054_s25 }
  0x4b   :  { %138 = vrot.lane.b32.xlu1 %v1130_v2, %s1054_s25  ;;  %136 = vrot.lane.b32.xlu0 %v1120_v0, %s1054_s25 }
  0x4f   :  { %160 = vrot.lane.b32.xlu1 %v1138_v3, %s1055_s26  ;;  %158 = vrot.lane.b32.xlu0 %v1122_v1, %s1055_s26 }
  0x53   :  { %164 = vrot.lane.b32.xlu1 %v1130_v2, %s1055_s26  ;;  %162 = vrot.lane.b32.xlu0 %v1120_v0, %s1055_s26 }
  0x57   :  { %147 = vrot.lane.b32.xlu1 %v1138_v3, %s1056_s27  ;;  %145 = vrot.lane.b32.xlu0 %v1122_v1, %s1056_s27 }
  0x5b   :  { %151 = vrot.lane.b32.xlu1 %v1130_v2, %s1056_s27  ;;  %149 = vrot.lane.b32.xlu0 %v1120_v0, %s1056_s27 }
  0x5f   :  { %173 = vrot.lane.b32.xlu1 %v1138_v3, %s1059_s28  ;;  %171 = vrot.lane.b32.xlu0 %v1122_v1, %s1059_s28 }
  0x63   :  { %177 = vrot.lane.b32.xlu1 %v1130_v2, %s1059_s28  ;;  %175 = vrot.lane.b32.xlu0 %v1120_v0, %s1059_s28 }
  0x67   :  { %273 = vperm.xlu0 %961, %v270_v6  }
  0x99   :  { %v98_v7 = vpop.permute.xlu1 %97  ;;  %v94_v8 = vpop.permute.xlu0 %93 }
  0x9d   :  { %v100_v9 = vpop.permute.xlu1 %99  ;;  %v120_v10 = vpop.permute.xlu0 %119 }
  0x9e   :  { %v102_v20 = vsel %vm101_vm0, %v98_v7, %v100_v9  ;;  %v105_v21 = vsel %vm101_vm0, %v100_v9, %v94_v8 }
  0x9f   :  { %v188_v28 = vrot.slane %v105_v21, 4  ;;  %v191_v29 = vrot.slane %v102_v20, 4 }
  0xa1   :  { %v122_v11 = vpop.permute.xlu1 %121  ;;  %v96_v12 = vpop.permute.xlu0 %95 }
  0xa2   :  { %v104_v19 = vsel %vm101_vm0, %v94_v8, %v96_v12  ;;  %v130_v22 = vsel %vm127_vm1, %v120_v10, %v122_v11  ;;  %v103_v31 = vsel %vm101_vm0, %v96_v12, %v98_v7 }
  0xa3   :  { %v189_v26 = vrot.slane %v104_v19, 4  ;;  %v201_v30 = vrot.slane %v130_v22, 4  ;;  %v190_v45 = vrot.slane %v103_v31, 4 }
  0xa5   :  { %v126_v14 = vpop.permute.xlu1 %125  ;;  %v124_v15 = vpop.permute.xlu0 %123 }
  0xa6   :  { %v131_v32 = vsel %vm127_vm1, %v126_v14, %v120_v10  ;;  %v128_v33 = vsel %vm127_vm1, %v124_v15, %v126_v14  ;;  %v129_v40 = vsel %vm127_vm1, %v122_v11, %v124_v15 }
  0xa7   :  { %v200_v47 = vrot.slane %v131_v32, 4  ;;  %v202_v53 = vrot.slane %v129_v40, 4  ;;  %v203_v54 = vrot.slane %v128_v33, 4 }
  0xa9   :  { %v81_v17 = vpop.permute.xlu1 %80  ;;  %v79_v18 = vpop.permute.xlu0 %78 }
  0xaa   :  { %v91_v25 = vsel %vm88_vm2, %v79_v18, %v81_v17 }
  0xab   :  { %v234_v39 = vsel %vm232_vm3, %v91_v25, %v189_v26 }
  0xac   :  { %v250_v48 = vmul.f32 %v234_v39, %v1227_v37 }
  0xad   :  { %v85_v23 = vpop.permute.xlu1 %84  ;;  %v83_v24 = vpop.permute.xlu0 %82 }
  0xae   :  { %v92_v27 = vsel %vm88_vm2, %v85_v23, %v79_v18  ;;  %v89_v34 = vsel %vm88_vm2, %v83_v24, %v85_v23  ;;  %v90_v42 = vsel %vm88_vm2, %v81_v17, %v83_v24 }
  0xaf   :  { %v233_v41 = vsel %vm232_vm3, %v92_v27, %v188_v28  ;;  %v236_v51 = vsel %vm232_vm3, %v89_v34, %v191_v29  ;;  %v235_v55 = vsel %vm232_vm3, %v90_v42, %v190_v45 }
  0xb0   :  { %v249_v59 = vmul.f32 %v233_v41, %v1239_v44  ;;  %v252_v10 = vmul.f32 %v236_v51, %v1244_v50  ;;  %v251_v13 = vmul.f32 %v235_v55, %v1247_v52  ;;  %v1307_v55 = vld [vmem:[#allocation2 + $0x50] sm:$0xff] }
  0xb1   :  { %v109_v35 = vpop.permute.xlu1 %108  ;;  %v107_v36 = vpop.permute.xlu0 %106 }
  0xb2   :  { %v117_v43 = vsel %vm114_vm4, %v107_v36, %v109_v35 }
  0xb3   :  { %v238_v46 = vsel %vm232_vm3, %v117_v43, %v201_v30 }
  0xb4   :  { %v254_v49 = vmul.f32 %v238_v46, %v1229_v38 }
  0xb5   :  { %v113_v56 = vpop.permute.xlu1 %112  ;;  %v111_v57 = vpop.permute.xlu0 %110 }
  0xb6   :  { %v118_v62 = vsel %vm114_vm4, %v113_v56, %v107_v36  ;;  %v115_v63 = vsel %vm114_vm4, %v111_v57, %v113_v56  ;;  %v116_v5 = vsel %vm114_vm4, %v109_v35, %v111_v57  ;;  %v914_v6 = vpack.c.bf16 %v254_v49, %v250_v48  ;;  %v1298_v48 = vld [vmem:[#allocation2 + $0x58] sm:$0xff] }
  0xb7   :  { %v237_v7 = vsel %vm232_vm3, %v118_v62, %v200_v47  ;;  %v239_v8 = vsel %vm232_vm3, %v116_v5, %v202_v53  ;;  %v240_v9 = vsel %vm232_vm3, %v115_v63, %v203_v54  ;;  %v1294_v47 = vld [vmem:[#allocation2 + $0x48] sm:$0xff]  ;;  %v1304_v53 = vld [vmem:[#allocation2 + $0x60] sm:$0xff]  ;;  %v1309_v62 = vld [vmem:[#allocation2 + $0x78] sm:$0xff] }
  0xb8   :  { %915 = vmatprep.subr.bf16.mxu0 %v914_v6  ;;  %v253_v11 = vmul.f32 %v237_v7, %v1250_v58  ;;  %v256_v12 = vmul.f32 %v240_v9, %v1253_v60  ;;  %v255_v14 = vmul.f32 %v239_v8, %v1255_v61  ;;  %v1311_v63 = vld [vmem:[#allocation2 + $0x68] sm:$0xff]  ;;  %v1313_v5 = vld [vmem:[#allocation2 + $0x70] sm:$0xff] }
  0xb9   :  { %v135_v15 = vpop.permute.xlu1 %134  ;;  %v133_v17 = vpop.permute.xlu0 %132 }
  0xba   :  { %v916_v18 = vpack.c.bf16 %v253_v11, %v249_v59  ;;  %v922_v19 = vpack.c.bf16 %v256_v12, %v252_v10  ;;  %v924_v20 = vpack.c.bf16 %v255_v14, %v251_v13  ;;  %v143_v27 = vsel %vm140_vm5, %v133_v17, %v135_v15  ;;  %v1323_v10 = vld [vmem:[#allocation2 + $0x40] sm:$0xff] }
  0xbb   :  { %v212_v34 = vrot.slane %v143_v27, 4  ;;  %v1335_v27 = vld [vmem:[#allocation2 + $0x98] sm:$0xf] }
  0xbc   :  { %917 = vmatpush1.bf16.msra.mxu0 %v916_v18  ;;  %923 = vmatprep.subr.bf16.mxu1 %v922_v19 }
  0xbd   :  { %v139_v21 = vpop.permute.xlu1 %138  ;;  %925 = vmatpush1.bf16.msra.mxu1 %v924_v20  ;;  %v137_v22 = vpop.permute.xlu0 %136  ;;  %v241_v49 = vsel %vm232_vm3, %v1122_v1, %v212_v34 }
  0xbe   :  { %v142_v25 = vsel %vm140_vm5, %v135_v15, %v137_v22  ;;  %v144_v26 = vsel %vm140_vm5, %v139_v21, %v133_v17  ;;  %v141_v28 = vsel %vm140_vm5, %v137_v22, %v139_v21  ;;  %v257_v22 = vmul.f32 %v241_v49, %v1323_v10 }
  0xbf   :  { %v213_v29 = vrot.slane %v142_v25, 4  ;;  %v215_v33 = vrot.slane %v144_v26, 4  ;;  %v214_v35 = vrot.slane %v141_v28, 4  ;;  %v1337_v28 = vld [vmem:[#allocation2 + $0x88] sm:$0xf] }
  0xc1   :  { %v161_v23 = vpop.permute.xlu1 %160  ;;  %v159_v24 = vpop.permute.xlu0 %158  ;;  %v242_v36 = vsel %vm232_vm3, %v1138_v3, %v213_v29  ;;  %v244_v3 = vsel %vm232_vm3, %v1130_v2, %v215_v33  ;;  %v243_v51 = vsel %vm232_vm3, %v1120_v0, %v214_v35  ;;  %v1339_v29 = vld [vmem:[#allocation2 + $0x90] sm:$0xf] }
  0xc2   :  { %v169_v32 = vsel %vm166_vm6, %v159_v24, %v161_v23  ;;  %v258_v6 = vmul.f32 %v242_v36, %v1294_v47  ;;  %v260_v9 = vmul.f32 %v244_v3, %v1298_v48  ;;  %v259_v19 = vmul.f32 %v243_v51, %v1307_v55 }
  0xc3   :  { %v224_v39 = vrot.slane %v169_v32, 4 }
  0xc5   :  { %v165_v30 = vpop.permute.xlu1 %164  ;;  %v163_v31 = vpop.permute.xlu0 %162 }
  0xc6   :  { %v170_v42 = vsel %vm166_vm6, %v165_v30, %v159_v24  ;;  %v167_v43 = vsel %vm166_vm6, %v163_v31, %v165_v30  ;;  %v168_v45 = vsel %vm166_vm6, %v161_v23, %v163_v31  ;;  %v1341_v30 = vld [vmem:[#allocation2 + $0x80] sm:$0xf] }
  0xc7   :  { %v227_v56 = vrot.slane %v170_v42, 4  ;;  %v225_v57 = vrot.slane %v168_v45, 4  ;;  %v226_v59 = vrot.slane %v167_v43, 4  ;;  %v269_v43 = vld [vmem:[%s1584_s2] sm:$0xf] }
  0xc9   :  { %v148_v40 = vpop.permute.xlu1 %147  ;;  %v146_v41 = vpop.permute.xlu0 %145 }
  0xca   :  { %v156_v46 = vsel %vm153_vm7, %v146_v41, %v148_v40 }
  0xcb   :  { %v245_v54 = vsel %vm232_vm3, %v156_v46, %v224_v39 }
  0xcc   :  { %v261_v11 = vmul.f32 %v245_v54, %v1304_v53 }
  0xcd   :  { %v152_v2 = vpop.permute.xlu1 %151  ;;  %v150_v1 = vpop.permute.xlu0 %149 }
  0xce   :  { %v157_v0 = vsel %vm153_vm7, %v152_v2, %v146_v41  ;;  %v154_v7 = vsel %vm153_vm7, %v150_v1, %v152_v2  ;;  %v155_v8 = vsel %vm153_vm7, %v148_v40, %v150_v1  ;;  %v920_v26 = vpack.c.bf16 %v261_v11, %v257_v22 }
  0xcf   :  { %v248_v12 = vsel %vm232_vm3, %v157_v0, %v227_v56  ;;  %v246_v13 = vsel %vm232_vm3, %v155_v8, %v225_v57  ;;  %v247_v14 = vsel %vm232_vm3, %v154_v7, %v226_v59 }
  0xd0   :  { %v264_v15 = vmul.f32 %v248_v12, %v1309_v62  ;;  %v262_v17 = vmul.f32 %v246_v13, %v1311_v63  ;;  %v263_v18 = vmul.f32 %v247_v14, %v1313_v5 }
  0xd1   :  { %v174_v20 = vpop.permute.xlu1 %173  ;;  %v172_v21 = vpop.permute.xlu0 %171 }
  0xd2   :  { %v918_v23 = vpack.c.bf16 %v262_v17, %v258_v6  ;;  %v926_v24 = vpack.c.bf16 %v264_v15, %v260_v9  ;;  %v928_v25 = vpack.c.bf16 %v263_v18, %v259_v19  ;;  %v182_v31 = vsel %vm179_vm8, %v172_v21, %v174_v20 }
  0xd3   :  { %v265_v42 = vmul.f32 %v182_v31, %v1341_v30 }
  0xd4   :  { %919 = vmatprep.subr.bf16.mxu0 %v918_v23  ;;  %927 = vmatprep.subr.bf16.mxu1 %v926_v24 }
  0xd5   :  { %v178_v32 = vpop.permute.xlu1 %177  ;;  %921 = vmatpush1.bf16.msra.mxu0 %v920_v26  ;;  %929 = vmatpush1.bf16.msra.mxu1 %v928_v25  ;;  %v176_v33 = vpop.permute.xlu0 %175 }
  0xd6   :  { %v183_v34 = vsel %vm179_vm8, %v178_v32, %v172_v21  ;;  %v180_v35 = vsel %vm179_vm8, %v176_v33, %v178_v32  ;;  %v181_v36 = vsel %vm179_vm8, %v174_v20, %v176_v33 }
  0xd7   :  { %v268_v39 = vmul.f32 %v183_v34, %v1335_v27  ;;  %v266_v40 = vmul.f32 %v181_v36, %v1337_v28  ;;  %v267_v41 = vmul.f32 %v180_v35, %v1339_v29 }
  0xd9   :  { %902 = vmatprep.subr.msk.mxu0 %vm232_vm3, %v266_v40  ;;  %905 = vmatprep.subr.msk.mxu1 %vm232_vm3, %v268_v39 }
  0xda   :  { %903 = vmatpush1.msk.msra.mxu0 %vm232_vm3, %v265_v42  ;;  %906 = vmatpush1.msk.msra.mxu1 %vm232_vm3, %v267_v41 }
  0xdb   :  { %904 = vmatmul.mubr.msk.f32.vlgmr.msra.gmra.mrb[0].mxu0 %vm276_vm9, %v269_v43  ;;  %907 = vmatmul.mubr.msk.f32.vlgmr.msra.gmra.mrb[0].mxu1 %vm276_vm9, %v269_v43 }
  0xdc   :  { %750 = vmatprep.mubr.f32.mxu0 %v1057_v4  ;;  %821 = vmatprep.mubr.f32.mxu1 %v1057_v4 }
  0xe6   :  { %v274_v45 = vpop.permute.xlu0 %273 }
 0x1ae   :  { %v358_v46 = vpop.f32.mrb[0].mxu0  ;;  %v429_v3 = vpop.f32.mrb[0].mxu1 }
 0x1af   :  { %v359_v49 = vadd.f32 %v358_v46, %v274_v45  ;;  %v430_v51 = vadd.f32 %v429_v3, %v274_v45  ;;  %v360_v54 = vpop.f32.mrb[1].mxu0  ;;  %v431_v56 = vpop.f32.mrb[1].mxu1 }
 0x1b0   :  { %v361_v57 = vadd.f32 %v360_v54, %v274_v45  ;;  %v432_v59 = vadd.f32 %v431_v56, %v274_v45 }
 0x1b1   :  { %v457_v2 = vsel %vm232_vm3, %v430_v51, 0.0  ;;  %v434_v1 = vsel %vm232_vm3, %v359_v49, 0.0  ;;  %v462_v6 = vmul.f32 %v430_v51, %v430_v51  ;;  %v439_v0 = vmul.f32 %v359_v49, %v359_v49 }
 0x1b2   :  { %v458_v7 = vsel %vm232_vm3, %v432_v59, 0.0  ;;  %v435_v8 = vsel %vm232_vm3, %v361_v57, 0.0  ;;  %v463_v4 = vmul.f32 %v432_v59, %v432_v59  ;;  %v440_v9 = vmul.f32 %v361_v57, %v361_v57 }
 0x1b3   :  { %v459_v11 = vadd.f32 %v458_v7, %v457_v2  ;;  %v436_v12 = vadd.f32 %v435_v8, %v434_v1  ;;  %v464_v13 = vsel %vm232_vm3, %v462_v6, 0.0  ;;  %v441_v15 = vsel %vm232_vm3, %v439_v0, 0.0 }
 0x1b4   :  { %v465_v14 = vsel %vm232_vm3, %v463_v4, 0.0  ;;  %v442_v17 = vsel %vm232_vm3, %v440_v9, 0.0 }
 0x1b5   :  { %460 = vadd.xlane.f32.xlu0 %v459_v11  ;;  %437 = vadd.xlane.f32.xlu1 %v436_v12  ;;  %v466_v18 = vadd.f32 %v465_v14, %v464_v13  ;;  %v443_v19 = vadd.f32 %v442_v17, %v441_v15 }
 0x1b9   :  { %467 = vadd.xlane.f32.xlu0 %v466_v18  ;;  %444 = vadd.xlane.f32.xlu1 %v443_v19 }
 0x242   :  { %v461_v20 = vpop.xlane.xlu0 %460  ;;  %v438_v21 = vpop.xlane.xlu1 %437 }
 0x243   :  { %v469_v22 = vmul.f32 0.00390625, %v461_v20  ;;  %v446_v23 = vmul.f32 0.00390625, %v438_v21 }
 0x245   :  { %v471_v26 = vmul.f32 %v469_v22, %v469_v22  ;;  %v448_v32 = vmul.f32 %v446_v23, %v446_v23  ;;  %v451_v43 = vsub.f32 %v359_v49, %v446_v23  ;;  %v452_v45 = vsub.f32 %v361_v57, %v446_v23 }
 0x246   :  { %v468_v24 = vpop.xlane.xlu0 %467  ;;  %v445_v25 = vpop.xlane.xlu1 %444  ;;  %v474_v3 = vsub.f32 %v430_v51, %v469_v22  ;;  %v475_v0 = vsub.f32 %v432_v59, %v469_v22  ;;  %v665_v51 = vld [vmem:[%s1587_s5] sm:$0xf] }
 0x247   :  { %v470_v31 = vmul.f32 0.00390625, %v468_v24  ;;  %v447_v33 = vmul.f32 0.00390625, %v445_v25 }
 0x249   :  { %v472_v34 = vsub.f32 %v470_v31, %v471_v26  ;;  %v449_v35 = vsub.f32 %v447_v33, %v448_v32 }
 0x24b   :  { %v473_v36 = vmax.f32 %v472_v34, 0.0  ;;  %v450_v39 = vmax.f32 %v449_v35, 0.0 }
 0x24d   :  { %v476_v40 = vadd.f32 1e-05, %v473_v36  ;;  %v453_v41 = vadd.f32 1e-05, %v450_v39 }
 0x24f   :  { %964 = vrsqrt.f32 %v476_v40 }
 0x250   :  { %966 = vrsqrt.f32 %v453_v41 }
 0x259   :  { %v965_v42 = vpop.eup %964 }
 0x25a   :  { %v967_v46 = vpop.eup %966  ;;  %v478_v2 = vmul.f32 %v965_v42, %v474_v3  ;;  %v479_v7 = vmul.f32 %v965_v42, %v475_v0 }
 0x25b   :  { %v455_v54 = vmul.f32 %v967_v46, %v451_v43  ;;  %v456_v56 = vmul.f32 %v967_v46, %v452_v45 }
 0x25c   :  { %v1382_v8 = vmax.f32 %v478_v2, 0.0  ;;  %v1388_v49 = vmax.f32 %v479_v7, 0.0 }
 0x25d   :  { %v1374_v1 = vmax.f32 %v455_v54, 0.0  ;;  %v1376_v6 = vmax.f32 %v456_v56, 0.0 }
 0x25f   :  { %498 = vrot.lane.b32.xlu0 %v1376_v6, %s1050_s22  ;;  %496 = vrot.lane.b32.xlu1 %v1374_v1, %s1050_s22 }
 0x263   :  { %520 = vrot.lane.b32.xlu0 %v1374_v1, %s1051_s1  ;;  %500 = vrot.lane.b32.xlu1 %v1382_v8, %s1050_s22 }
 0x267   :  { %524 = vrot.lane.b32.xlu0 %v1382_v8, %s1051_s1  ;;  %502 = vrot.lane.b32.xlu1 %v1388_v49, %s1050_s22 }
 0x26b   :  { %484 = vrot.lane.b32.xlu0 %v1374_v1, %s1052_s23  ;;  %522 = vrot.lane.b32.xlu1 %v1376_v6, %s1051_s1 }
 0x26f   :  { %488 = vrot.lane.b32.xlu0 %v1382_v8, %s1052_s23  ;;  %526 = vrot.lane.b32.xlu1 %v1388_v49, %s1051_s1 }
 0x273   :  { %508 = vrot.lane.b32.xlu0 %v1374_v1, %s1053_s24  ;;  %486 = vrot.lane.b32.xlu1 %v1376_v6, %s1052_s23 }
 0x277   :  { %512 = vrot.lane.b32.xlu0 %v1382_v8, %s1053_s24  ;;  %490 = vrot.lane.b32.xlu1 %v1388_v49, %s1052_s23 }
 0x27b   :  { %532 = vrot.lane.b32.xlu0 %v1374_v1, %s1054_s25  ;;  %510 = vrot.lane.b32.xlu1 %v1376_v6, %s1053_s24 }
 0x27f   :  { %536 = vrot.lane.b32.xlu0 %v1382_v8, %s1054_s25  ;;  %514 = vrot.lane.b32.xlu1 %v1388_v49, %s1053_s24 }
 0x283   :  { %556 = vrot.lane.b32.xlu0 %v1374_v1, %s1055_s26  ;;  %534 = vrot.lane.b32.xlu1 %v1376_v6, %s1054_s25 }
 0x287   :  { %560 = vrot.lane.b32.xlu0 %v1382_v8, %s1055_s26  ;;  %538 = vrot.lane.b32.xlu1 %v1388_v49, %s1054_s25 }
 0x28b   :  { %544 = vrot.lane.b32.xlu0 %v1374_v1, %s1056_s27  ;;  %558 = vrot.lane.b32.xlu1 %v1376_v6, %s1055_s26 }
 0x28f   :  { %548 = vrot.lane.b32.xlu0 %v1382_v8, %s1056_s27  ;;  %562 = vrot.lane.b32.xlu1 %v1388_v49, %s1055_s26 }
 0x293   :  { %568 = vrot.lane.b32.xlu0 %v1374_v1, %s1059_s28  ;;  %546 = vrot.lane.b32.xlu1 %v1376_v6, %s1056_s27 }
 0x297   :  { %572 = vrot.lane.b32.xlu0 %v1382_v8, %s1059_s28  ;;  %550 = vrot.lane.b32.xlu1 %v1388_v49, %s1056_s27 }
 0x29b   :  { %668 = vperm.xlu0 %961, %v665_v51   ;;  %570 = vrot.lane.b32.xlu1 %v1376_v6, %s1059_s28 }
 0x29f   :  { %574 = vrot.lane.b32.xlu1 %v1388_v49, %s1059_s28 }
 0x2d1   :  { %v499_v57 = vpop.permute.xlu0 %498  ;;  %v497_v59 = vpop.permute.xlu1 %496 }
 0x2d2   :  { %v506_v20 = vsel %vm101_vm0, %v497_v59, %v499_v57 }
 0x2d3   :  { %v585_v26 = vrot.slane %v506_v20, 4 }
 0x2d5   :  { %v521_v4 = vpop.permute.xlu0 %520  ;;  %v501_v9 = vpop.permute.xlu1 %500 }
 0x2d6   :  { %v505_v31 = vsel %vm101_vm0, %v499_v57, %v501_v9 }
 0x2d7   :  { %v586_v7 = vrot.slane %v505_v31, 4 }
 0x2d9   :  { %v525_v11 = vpop.permute.xlu0 %524  ;;  %v503_v12 = vpop.permute.xlu1 %502 }
 0x2da   :  { %v504_v32 = vsel %vm101_vm0, %v501_v9, %v503_v12  ;;  %v507_v33 = vsel %vm101_vm0, %v503_v12, %v497_v59 }
 0x2db   :  { %v584_v54 = vrot.slane %v507_v33, 4  ;;  %v587_v56 = vrot.slane %v504_v32, 4 }
 0x2dd   :  { %v485_v13 = vpop.permute.xlu0 %484  ;;  %v523_v14 = vpop.permute.xlu1 %522 }
 0x2de   :  { %v530_v21 = vsel %vm127_vm1, %v521_v4, %v523_v14  ;;  %v529_v24 = vsel %vm127_vm1, %v523_v14, %v525_v11 }
 0x2df   :  { %v597_v34 = vrot.slane %v530_v21, 4  ;;  %v598_v35 = vrot.slane %v529_v24, 4 }
 0x2e1   :  { %v489_v15 = vpop.permute.xlu0 %488  ;;  %v527_v17 = vpop.permute.xlu1 %526 }
 0x2e2   :  { %v528_v36 = vsel %vm127_vm1, %v525_v11, %v527_v17  ;;  %v531_v39 = vsel %vm127_vm1, %v527_v17, %v521_v4 }
 0x2e3   :  { %v596_v4 = vrot.slane %v531_v39, 4  ;;  %v599_v9 = vrot.slane %v528_v36, 4 }
 0x2e5   :  { %v509_v18 = vpop.permute.xlu0 %508  ;;  %v487_v19 = vpop.permute.xlu1 %486 }
 0x2e6   :  { %v494_v25 = vsel %vm88_vm2, %v485_v13, %v487_v19  ;;  %v493_v2 = vsel %vm88_vm2, %v487_v19, %v489_v15 }
 0x2e7   :  { %v629_v40 = vsel %vm232_vm3, %v494_v25, %v585_v26  ;;  %v630_v17 = vsel %vm232_vm3, %v493_v2, %v586_v7 }
 0x2e8   :  { %v645_v51 = vmul.f32 %v629_v40, %v1227_v37 }
 0x2e9   :  { %v513_v22 = vpop.permute.xlu0 %512  ;;  %v491_v23 = vpop.permute.xlu1 %490 }
 0x2ea   :  { %v492_v43 = vsel %vm88_vm2, %v489_v15, %v491_v23  ;;  %v495_v45 = vsel %vm88_vm2, %v491_v23, %v485_v13 }
 0x2eb   :  { %v628_v11 = vsel %vm232_vm3, %v495_v45, %v584_v54  ;;  %v631_v12 = vsel %vm232_vm3, %v492_v43, %v587_v56 }
 0x2ec   :  { %v644_v23 = vmul.f32 %v628_v11, %v1239_v44  ;;  %v647_v24 = vmul.f32 %v631_v12, %v1244_v50 }
 0x2ed   :  { %v533_v41 = vpop.permute.xlu0 %532  ;;  %v511_v42 = vpop.permute.xlu1 %510 }
 0x2ee   :  { %v517_v46 = vsel %vm114_vm4, %v511_v42, %v513_v22  ;;  %v518_v3 = vsel %vm114_vm4, %v509_v18, %v511_v42 }
 0x2ef   :  { %v633_v0 = vsel %vm232_vm3, %v518_v3, %v597_v34  ;;  %v634_v57 = vsel %vm232_vm3, %v517_v46, %v598_v35 }
 0x2f0   :  { %v649_v59 = vmul.f32 %v633_v0, %v1229_v38  ;;  %v650_v20 = vmul.f32 %v634_v57, %v1255_v61 }
 0x2f1   :  { %v537_v13 = vpop.permute.xlu0 %536  ;;  %v515_v14 = vpop.permute.xlu1 %514 }
 0x2f2   :  { %v516_v15 = vsel %vm114_vm4, %v513_v22, %v515_v14  ;;  %v519_v37 = vsel %vm114_vm4, %v515_v14, %v509_v18  ;;  %v930_v19 = vpack.c.bf16 %v649_v59, %v645_v51  ;;  %v646_v22 = vmul.f32 %v630_v17, %v1247_v52 }
 0x2f3   :  { %v632_v38 = vsel %vm232_vm3, %v519_v37, %v596_v4  ;;  %v635_v21 = vsel %vm232_vm3, %v516_v15, %v599_v9 }
 0x2f4   :  { %v648_v25 = vmul.f32 %v632_v38, %v1250_v58  ;;  %v651_v26 = vmul.f32 %v635_v21, %v1253_v60  ;;  %931 = vmatprep.subr.bf16.mxu0 %v930_v19  ;;  %v940_v61 = vpack.c.bf16 %v650_v20, %v646_v22 }
 0x2f5   :  { %v557_v31 = vpop.permute.xlu0 %556  ;;  %v535_v18 = vpop.permute.xlu1 %534 }
 0x2f6   :  { %v932_v32 = vpack.c.bf16 %v648_v25, %v644_v23  ;;  %v938_v33 = vpack.c.bf16 %v651_v26, %v647_v24  ;;  %v541_v44 = vsel %vm140_vm5, %v535_v18, %v537_v13  ;;  %v542_v50 = vsel %vm140_vm5, %v533_v41, %v535_v18 }
 0x2f7   :  { %v608_v36 = vrot.slane %v542_v50, 4  ;;  %v609_v52 = vrot.slane %v541_v44, 4 }
 0x2f8   :  { %933 = vmatpush1.bf16.msra.mxu0 %v932_v32  ;;  %939 = vmatprep.subr.bf16.mxu1 %v938_v33 }
 0x2f9   :  { %v561_v34 = vpop.permute.xlu0 %560  ;;  %941 = vmatpush1.bf16.msra.mxu1 %v940_v61  ;;  %v539_v35 = vpop.permute.xlu1 %538  ;;  %v636_v3 = vsel %vm232_vm3, %v1374_v1, %v608_v36  ;;  %v637_v54 = vsel %vm232_vm3, %v1376_v6, %v609_v52 }
 0x2fa   :  { %v540_v42 = vsel %vm140_vm5, %v537_v13, %v539_v35  ;;  %v543_v43 = vsel %vm140_vm5, %v539_v35, %v533_v41  ;;  %v652_v11 = vmul.f32 %v636_v3, %v1323_v10  ;;  %v653_v14 = vmul.f32 %v637_v54, %v1294_v47 }
 0x2fb   :  { %v610_v56 = vrot.slane %v540_v42, 4  ;;  %v611_v2 = vrot.slane %v543_v43, 4 }
 0x2fd   :  { %v545_v58 = vpop.permute.xlu0 %544  ;;  %v559_v60 = vpop.permute.xlu1 %558  ;;  %v638_v17 = vsel %vm232_vm3, %v1382_v8, %v610_v56  ;;  %v639_v15 = vsel %vm232_vm3, %v1388_v49, %v611_v2 }
 0x2fe   :  { %v565_v45 = vsel %vm166_vm6, %v559_v60, %v561_v34  ;;  %v566_v46 = vsel %vm166_vm6, %v557_v31, %v559_v60  ;;  %v654_v8 = vmul.f32 %v638_v17, %v1307_v55  ;;  %v655_v24 = vmul.f32 %v639_v15, %v1298_v48  ;;  %v664_v48 = vld [vmem:[%s1586_s4] sm:$0xf]  ;;  %s1060_s4 = smov [#allocation7]  }
 0x2ff   :  { %v620_v0 = vrot.slane %v566_v46, 4  ;;  %v621_v7 = vrot.slane %v565_v45, 4  ;;  %s892_s10 = sshll.u32 %s1060_s4, 4  ;;  %s893_s10 = int_to_ptr.vmem [resolvable:$true] %s892_s10 }
 0x300   :  { %s1018_s11 = scalar_lea.vmem %s893_s10, 256  ;;  %p1023_p3 = scmp.lt.s32.totalorder %s893_s10, %s893_s10 }
 0x301   :  { %v549_v39 = vpop.permute.xlu0 %548  ;;  %v563_v40 = vpop.permute.xlu1 %562  ;;  %p1019_p2 = scmp.ne.s32.totalorder %s893_s10, %s1018_s11  ;;  %p1024_p4 = scmp.lt.s32.totalorder %s1018_s11, %s1018_s11 }
 0x302   :  { %v564_v41 = vsel %vm166_vm6, %v561_v34, %v563_v40  ;;  %v567_v57 = vsel %vm166_vm6, %v563_v40, %v557_v31 }
 0x303   :  { %v622_v37 = vrot.slane %v564_v41, 4  ;;  %v623_v19 = vrot.slane %v567_v57, 4  ;;  %p1025_p5 = por %p1024_p4, %p1023_p3 }
 0x305   :  { %v547_v51 = vpop.permute.xlu1 %546  ;;  %v569_v4 = vpop.permute.xlu0 %568  ;;  %p1026_p6 = pnand %p1025_p5, %p1019_p2 }
 0x306   :  { %v553_v59 = vsel %vm153_vm7, %v547_v51, %v549_v39  ;;  %v554_v1 = vsel %vm153_vm7, %v545_v58, %v547_v51 }
 0x307   :  { %v640_v6 = vsel %vm232_vm3, %v554_v1, %v620_v0  ;;  %v641_v9 = vsel %vm232_vm3, %v553_v59, %v621_v7 }
 0x308   :  { %v656_v12 = vmul.f32 %v640_v6, %v1304_v53  ;;  %v657_v13 = vmul.f32 %v641_v9, %v1311_v63 }
 0x309   :  { %v551_v20 = vpop.permute.xlu1 %550  ;;  %v573_v25 = vpop.permute.xlu0 %572 }
 0x30a   :  { %v936_v38 = vpack.c.bf16 %v656_v12, %v652_v11  ;;  %v552_v21 = vsel %vm153_vm7, %v549_v39, %v551_v20  ;;  %v555_v53 = vsel %vm153_vm7, %v551_v20, %v545_v58  ;;  %v934_v10 = vpack.c.bf16 %v657_v13, %v653_v14 }
 0x30b   :  { %v642_v63 = vsel %vm232_vm3, %v552_v21, %v622_v37  ;;  %v643_v47 = vsel %vm232_vm3, %v555_v53, %v623_v19 }
 0x30c   :  { %v658_v23 = vmul.f32 %v642_v63, %v1313_v5  ;;  %v659_v49 = vmul.f32 %v643_v47, %v1309_v62  ;;  %935 = vmatprep.subr.bf16.mxu0 %v934_v10 }
 0x30d   :  { %937 = vmatpush1.bf16.msra.mxu0 %v936_v38  ;;  %v571_v26 = vpop.permute.xlu1 %570 }
 0x30e   :  { %v944_v22 = vpack.c.bf16 %v658_v23, %v654_v8  ;;  %v577_v31 = vsel %vm179_vm8, %v571_v26, %v573_v25  ;;  %v578_v18 = vsel %vm179_vm8, %v569_v4, %v571_v26  ;;  %v942_v32 = vpack.c.bf16 %v659_v49, %v655_v24 }
 0x30f   :  { %v660_v55 = vmul.f32 %v578_v18, %v1341_v30  ;;  %v661_v5 = vmul.f32 %v577_v31, %v1337_v28  ;;  %v972_v31 = vld [vmem:[#allocation5 + $0x8] sm:$0xff] }
 0x310   :  { %943 = vmatprep.subr.bf16.mxu1 %v942_v32  ;;  %v973_v32 = vld [vmem:[#allocation5] sm:$0xff] }
 0x311   :  { %908 = vmatprep.subr.msk.mxu0 %vm232_vm3, %v661_v5  ;;  %945 = vmatpush1.bf16.msra.mxu1 %v944_v22  ;;  %v575_v62 = vpop.permute.xlu1 %574 }
 0x312   :  { %v576_v33 = vsel %vm179_vm8, %v573_v25, %v575_v62  ;;  %v579_v61 = vsel %vm179_vm8, %v575_v62, %v569_v4  ;;  %909 = vmatpush1.msk.msra.mxu0 %vm232_vm3, %v660_v55 }
 0x313   :  { %v662_v30 = vmul.f32 %v576_v33, %v1339_v29  ;;  %v663_v28 = vmul.f32 %v579_v61, %v1335_v27  ;;  %910 = vmatmul.mubr.msk.f32.vlgmr.msra.gmra.mrb[2].mxu0 %vm276_vm9, %v664_v48 }
 0x315   :  { %911 = vmatprep.subr.msk.mxu1 %vm232_vm3, %v663_v28 }
 0x316   :  { %912 = vmatpush1.msk.msra.mxu1 %vm232_vm3, %v662_v30 }
 0x317   :  { %913 = vmatmul.mubr.msk.f32.vlgmr.msra.gmra.mrb[2].mxu1 %vm276_vm9, %v664_v48 }
 0x31a   :  { %v669_v34 = vpop.permute.xlu0 %668 }
 0x3e6   :  { %v752_v35 = vpop.f32.mrb[2].mxu0 }
 0x3e7   :  { %v753_v44 = vadd.f32 %v752_v35, %v669_v34  ;;  %v754_v50 = vpop.f32.mrb[3].mxu0 }
 0x3e8   :  { %v755_v16 = vadd.f32 %v754_v50, %v669_v34 }
 0x3e9   :  { %v828_v58 = vsel %vm232_vm3, %v753_v44, 0.0  ;;  %v833_v40 = vmul.f32 %v753_v44, %v753_v44 }
 0x3ea   :  { %v823_v60 = vpop.f32.mrb[2].mxu1  ;;  %v829_v29 = vsel %vm232_vm3, %v755_v16, 0.0  ;;  %v834_v42 = vmul.f32 %v755_v16, %v755_v16 }
 0x3eb   :  { %v824_v36 = vadd.f32 %v823_v60, %v669_v34  ;;  %v825_v27 = vpop.f32.mrb[3].mxu1  ;;  %v830_v52 = vadd.f32 %v829_v29, %v828_v58  ;;  %v835_v0 = vsel %vm232_vm3, %v833_v40, 0.0 }
 0x3ec   :  { %v826_v39 = vadd.f32 %v825_v27, %v669_v34  ;;  %v836_v7 = vsel %vm232_vm3, %v834_v42, 0.0 }
 0x3ed   :  { %831 = vadd.xlane.f32.xlu1 %v830_v52  ;;  %v851_v43 = vsel %vm232_vm3, %v824_v36, 0.0  ;;  %v856_v45 = vmul.f32 %v824_v36, %v824_v36  ;;  %v837_v41 = vadd.f32 %v836_v7, %v835_v0 }
 0x3ee   :  { %v852_v46 = vsel %vm232_vm3, %v826_v39, 0.0  ;;  %v857_v3 = vmul.f32 %v826_v39, %v826_v39 }
 0x3ef   :  { %v853_v54 = vadd.f32 %v852_v46, %v851_v43  ;;  %v858_v56 = vsel %vm232_vm3, %v856_v45, 0.0 }
 0x3f0   :  { %v859_v2 = vsel %vm232_vm3, %v857_v3, 0.0 }
 0x3f1   :  { %854 = vadd.xlane.f32.xlu0 %v853_v54  ;;  %v860_v51 = vadd.f32 %v859_v2, %v858_v56 }
 0x3f3   :  { %861 = vadd.xlane.f32.xlu1 %v860_v51 }
 0x3f5   :  { %838 = vadd.xlane.f32.xlu0 %v837_v41 }
 0x47a   :  { %v832_v57 = vpop.xlane.xlu1 %831 }
 0x47b   :  { %v840_v1 = vmul.f32 0.00390625, %v832_v57 }
 0x47d   :  { %v842_v17 = vmul.f32 %v840_v1, %v840_v1  ;;  %v845_v63 = vsub.f32 %v753_v44, %v840_v1  ;;  %v846_v47 = vsub.f32 %v755_v16, %v840_v1 }
 0x47e   :  { %v855_v59 = vpop.xlane.xlu0 %854 }
 0x47f   :  { %v863_v4 = vmul.f32 0.00390625, %v855_v59 }
 0x480   :  { %v862_v6 = vpop.xlane.xlu1 %861 }
 0x481   :  { %v865_v9 = vmul.f32 %v863_v4, %v863_v4  ;;  %v864_v11 = vmul.f32 0.00390625, %v862_v6  ;;  %v868_v21 = vsub.f32 %v824_v36, %v863_v4  ;;  %v869_v53 = vsub.f32 %v826_v39, %v863_v4 }
 0x482   :  { %v839_v12 = vpop.xlane.xlu0 %838 }
 0x483   :  { %v866_v13 = vsub.f32 %v864_v11, %v865_v9  ;;  %v841_v14 = vmul.f32 0.00390625, %v839_v12 }
 0x485   :  { %v867_v15 = vmax.f32 %v866_v13, 0.0  ;;  %v843_v37 = vsub.f32 %v841_v14, %v842_v17 }
 0x487   :  { %v870_v19 = vadd.f32 1e-05, %v867_v15  ;;  %v844_v20 = vmax.f32 %v843_v37, 0.0 }
 0x489   :  { %968 = vrsqrt.f32 %v870_v19  ;;  %v847_v38 = vadd.f32 1e-05, %v844_v20 }
 0x48b   :  { %970 = vrsqrt.f32 %v847_v38 }
 0x493   :  { %v969_v10 = vpop.eup %968 }
 0x494   :  { %v872_v8 = vmul.f32 %v969_v10, %v868_v21  ;;  %v873_v23 = vmul.f32 %v969_v10, %v869_v53 }
 0x495   :  { %v971_v49 = vpop.eup %970 }
 0x496   :  { %v849_v24 = vmul.f32 %v971_v49, %v845_v63  ;;  %v850_v25 = vmul.f32 %v971_v49, %v846_v47  ;;  %v879_v26 = vcombine.low %v872_v8, %v873_v23 }
 0x498   :  { %v878_v22 = vcombine.low %v849_v24, %v850_v25  ;;  %v883_v18 = vadd.f32 %v972_v31, %v879_v26 }
 0x49a   :  { %v882_v55 = vadd.f32 %v973_v32, %v878_v22  ;;  %885 = vst [vmem:[#allocation7 + $0x8] sm:$0xff] %v883_v18 }
 0x49c   :  { %884 = vst [vmem:[#allocation7] sm:$0xff] %v882_v55 }
 0x49d   :  { %1029 = shalt.err (!%p1026_p6)
}
 0x49e   :  { %s1030_s14 = scalar_lea.hbm %s1588_s6, 256 }
 0x49f   :  { %p1031_p7 = scmp.ne.s32.totalorder %s1588_s6, %s1030_s14  ;;  %p1034_p8 = scmp.lt.u32.totalorder %s1030_s14, %s1588_s6 }
 0x4a1   :  { %p1036_p9 = pnand %p1034_p8, %p1031_p7 }
 0x4a3   :  { %1039 = shalt.err (!%p1036_p9)
}
 0x4a4   :  { %895 = dma.vmem_to_hbm [thread:$0]  %s893_s10, 256, %s1588_s6, [#allocation4]  }
 0x4a5   :  { %1044 = dma.done.wait [#allocation4], 256  }
 0x4a6   :  { %1045 = vsyncadd [#allocation4], 4294967040 }
 0x4a7   :  { %899 = vsyncpa [#allocation3], 1 }
 0x4a8   :  { %900 = vsyncpa [#allocation6], 1 }
 0x4a9   :  { %901 = vsyncpa [#allocation4], 1 }

</bundles_post_ra>
